<compile_context>
chip_gen: v7x
topology: tpu7x:2x2x1
jax: 0.10.0
libtpu: 0.0.40
codegen_flags: <defaults>
</compile_context>

<pallas_src>
import functools

import jax
import jax.numpy as jnp
from jax.experimental import pallas as pl
from jax.experimental.pallas import tpu as pltpu

LANES = 128
SUBLANES = 8


def _round_up(a, m):
    return ((a + m - 1) // m) * m


def _make_mlp_kernel(in_features, hidden, chunk):
    def mlp_kernel(x_ref, w1_ref, b1_ref, w2_ref, b2_ref, o_ref):
        # x_ref : (in_features, TR, 128) f32 VMEM   (batch on sublanes+lanes)
        # o_ref : (TR, 128)              f32 VMEM
        # w1_ref: (in_features, hidden)  f32 SMEM,  b1_ref: (hidden,) SMEM
        # w2_ref: (hidden, 1)            f32 SMEM,  b2_ref: (1,)      SMEM
        tr = o_ref.shape[0]

        # Hoist all SMEM scalar reads above the chunk loop.
        w1 = [[w1_ref[k, j] for j in range(hidden)] for k in range(in_features)]
        b1 = [b1_ref[j] for j in range(hidden)]
        w2 = [w2_ref[j, 0] for j in range(hidden)]
        b2 = b2_ref[0]

        n_chunks = tr // chunk
        # Fully-unrolled chunk loop with static slices: each chunk's x/h/acc
        # live entirely in vregs and die at the o_ref store.
        for c in range(n_chunks):
            r0 = c * chunk
            xs = [x_ref[k, r0:r0 + chunk, :] for k in range(in_features)]
            acc = None
            for j in range(hidden):                       # hidden = 10, unrolled
                h = xs[0] * w1[0][j]
                for k in range(1, in_features):           # in_features = 2
                    h = h + xs[k] * w1[k][j]
                h = jnp.maximum(h + b1[j], 0.0)           # bias + ReLU on VPU
                t = h * w2[j]
                acc = t if acc is None else acc + t
            o_ref[r0:r0 + chunk, :] = (acc + b2).astype(o_ref.dtype)

    return mlp_kernel


def cuda_neural_network_forward(x, w1, b1, w2, b2, *, block_rows=1024,
                                chunk_rows=32):
    """Pallas equivalent of CUDANeuralNetwork.forward.

    x:  (B, 2) float32
    w1: (2, 10)  -- stored (in, out), i.e. PyTorch Linear weight transposed
    b1: (10,)
    w2: (10, 1)
    b2: (1,)
    returns (B, 1) float32
    """
    B, in_features = x.shape
    hidden = w1.shape[1]
    x = x.astype(jnp.float32)

    # --- Batch layout: (B, 2) -> feature-major (2, R, 128), R multiple of 8.
    bp1 = _round_up(max(B, 1), SUBLANES * LANES)
    r1 = bp1 // LANES

    # Rows per grid step (TR): big enough to amortize per-step overhead,
    # but keep >= 2 grid steps when there's enough work (v7x megacore).
    tr = min(block_rows, r1)
    if tr == r1 and r1 >= 2 * SUBLANES:
        tr = _round_up((r1 + 1) // 2, SUBLANES)
    tr = _round_up(tr, SUBLANES)

    # Pad the batch so R is an exact multiple of TR (no ragged blocks).
    Bp = _round_up(max(B, 1), tr * LANES)
    R = Bp // LANES
    grid = (pl.cdiv(R, tr),)

    # Inner vreg-scale chunk (rows): largest of chunk_rows/16/8 dividing TR.
    chunk = next(c for c in (chunk_rows, 16, 8) if tr % c == 0)

    # TODO(synk): a producer that already emits x feature-major (2, B) would
    # remove this pad+transpose pre-pass (~16 B/elem of extra HBM traffic).
    x_pad = jnp.pad(x, ((0, Bp - B), (0, 0)))
    x_t = x_pad.T.reshape(in_features, R, LANES)

    smem = pl.BlockSpec(memory_space=pltpu.MemorySpace.SMEM)

    out = pl.pallas_call(
        _make_mlp_kernel(in_features, hidden, chunk),
        out_shape=jax.ShapeDtypeStruct((R, LANES), jnp.float32),
        grid=grid,
        in_specs=[
            pl.BlockSpec((in_features, tr, LANES), lambda i: (0, i, 0)),  # x
            smem,  # w1 (resident scalars)
            smem,  # b1
            smem,  # w2
            smem,  # b2
        ],
        out_specs=pl.BlockSpec((tr, LANES), lambda i: (i, 0)),
        compiler_params=pltpu.CompilerParams(
            dimension_semantics=("parallel",),
            vmem_limit_bytes=32 * 1024 * 1024),
        cost_estimate=pl.CostEstimate(
            flops=7 * hidden * Bp,
            transcendentals=0,
            bytes_accessed=(in_features + 1) * 4 * Bp + 256),
    )(x_t, w1.astype(jnp.float32), b1.astype(jnp.float32),
      w2.astype(jnp.float32), b2.astype(jnp.float32))

    # Back to the PyTorch (B, 1) layout, dropping batch padding.
    return out.reshape(Bp)[:B].reshape(B, 1)


def init_params(key):
    """Deterministic init mimicking PyTorch nn.Linear defaults
    (uniform in +/- 1/sqrt(fan_in)); weights stored as (in, out)."""
    k1, k2, k3, k4 = jax.random.split(key, 4)
    bound1 = 1.0 / jnp.sqrt(2.0)   # fan_in = 2
    bound2 = 1.0 / jnp.sqrt(10.0)  # fan_in = 10
    w1 = jax.random.uniform(k1, (2, 10), jnp.float32, -bound1, bound1)
    b1 = jax.random.uniform(k2, (10,), jnp.float32, -bound1, bound1)
    w2 = jax.random.uniform(k3, (10, 1), jnp.float32, -bound2, bound2)
    b2 = jax.random.uniform(k4, (1,), jnp.float32, -bound2, bound2)
    return w1, b1, w2, b2


if __name__ == "__main__":
    key = jax.random.PRNGKey(0)
    k_x, k_x2, k_p = jax.random.split(key, 3)

    w1, b1, w2, b2 = init_params(k_p)

    def ref_fn(xv):
        return jnp.maximum(xv @ w1 + b1, 0.0) @ w2 + b2

    # Small shape consistent with the module: (batch, 2).
    batch = 8
    x = jax.random.normal(k_x, (batch, 2), dtype=jnp.float32)
    out = jax.block_until_ready(cuda_neural_network_forward(x, w1, b1, w2, b2))
    assert out.shape == (batch, 1)
    assert jnp.allclose(out, ref_fn(x), atol=1e-5, rtol=1e-5)

    # Second size exercising the multi-step pipelined grid (still tiny).
    batch2 = 2500
    x2 = jax.random.normal(k_x2, (batch2, 2), dtype=jnp.float32)
    out2 = jax.block_until_ready(cuda_neural_network_forward(x2, w1, b1, w2, b2))
    assert out2.shape == (batch2, 1)
    assert jnp.allclose(out2, ref_fn(x2), atol=1e-5, rtol=1e-5)

    print("KERNEL_OK")
</pallas_src>

<mosaic_0001>
module attributes {stable_mosaic.version = 11 : i64} {
  func.func @mlp_kernel(%arg0: i32, %arg1: memref<2x8x128xf32, #tpu.memory_space<vmem>>, %arg2: memref<2x10xf32, #tpu.memory_space<smem>>, %arg3: memref<10xf32, #tpu.memory_space<smem>>, %arg4: memref<10x1xf32, #tpu.memory_space<smem>>, %arg5: memref<1xf32, #tpu.memory_space<smem>>, %arg6: memref<8x128xf32, #tpu.memory_space<vmem>>) attributes {dimension_semantics = [#tpu.dimension_semantics<parallel>], iteration_bounds = array<i64: 1>, scalar_prefetch = 0 : i64, scratch_operands = 0 : i64, tpu.core_type = #tpu.core_type<tc>, window_params = [{transform_indices = @transform_0, window_bounds = array<i64: 2, 8, 128>}, {transform_indices = @transform_1, window_bounds = array<i64: 2, 10>}, {transform_indices = @transform_2, window_bounds = array<i64: 10>}, {transform_indices = @transform_3, window_bounds = array<i64: 10, 1>}, {transform_indices = @transform_4, window_bounds = array<i64: 1>}, {transform_indices = @transform_5, window_bounds = array<i64: 8, 128>}]} {
    %c0 = arith.constant 0 : index
    %c0_0 = arith.constant 0 : index
    %0 = memref.load %arg2[%c0, %c0_0] : memref<2x10xf32, #tpu.memory_space<smem>>
    %c0_1 = arith.constant 0 : index
    %c1 = arith.constant 1 : index
    %1 = memref.load %arg2[%c0_1, %c1] : memref<2x10xf32, #tpu.memory_space<smem>>
    %c0_2 = arith.constant 0 : index
    %c2 = arith.constant 2 : index
    %2 = memref.load %arg2[%c0_2, %c2] : memref<2x10xf32, #tpu.memory_space<smem>>
    %c0_3 = arith.constant 0 : index
    %c3 = arith.constant 3 : index
    %3 = memref.load %arg2[%c0_3, %c3] : memref<2x10xf32, #tpu.memory_space<smem>>
    %c0_4 = arith.constant 0 : index
    %c4 = arith.constant 4 : index
    %4 = memref.load %arg2[%c0_4, %c4] : memref<2x10xf32, #tpu.memory_space<smem>>
    %c0_5 = arith.constant 0 : index
    %c5 = arith.constant 5 : index
    %5 = memref.load %arg2[%c0_5, %c5] : memref<2x10xf32, #tpu.memory_space<smem>>
    %c0_6 = arith.constant 0 : index
    %c6 = arith.constant 6 : index
    %6 = memref.load %arg2[%c0_6, %c6] : memref<2x10xf32, #tpu.memory_space<smem>>
    %c0_7 = arith.constant 0 : index
    %c7 = arith.constant 7 : index
    %7 = memref.load %arg2[%c0_7, %c7] : memref<2x10xf32, #tpu.memory_space<smem>>
    %c0_8 = arith.constant 0 : index
    %c8 = arith.constant 8 : index
    %8 = memref.load %arg2[%c0_8, %c8] : memref<2x10xf32, #tpu.memory_space<smem>>
    %c0_9 = arith.constant 0 : index
    %c9 = arith.constant 9 : index
    %9 = memref.load %arg2[%c0_9, %c9] : memref<2x10xf32, #tpu.memory_space<smem>>
    %c1_10 = arith.constant 1 : index
    %c0_11 = arith.constant 0 : index
    %10 = memref.load %arg2[%c1_10, %c0_11] : memref<2x10xf32, #tpu.memory_space<smem>>
    %c1_12 = arith.constant 1 : index
    %c1_13 = arith.constant 1 : index
    %11 = memref.load %arg2[%c1_12, %c1_13] : memref<2x10xf32, #tpu.memory_space<smem>>
    %c1_14 = arith.constant 1 : index
    %c2_15 = arith.constant 2 : index
    %12 = memref.load %arg2[%c1_14, %c2_15] : memref<2x10xf32, #tpu.memory_space<smem>>
    %c1_16 = arith.constant 1 : index
    %c3_17 = arith.constant 3 : index
    %13 = memref.load %arg2[%c1_16, %c3_17] : memref<2x10xf32, #tpu.memory_space<smem>>
    %c1_18 = arith.constant 1 : index
    %c4_19 = arith.constant 4 : index
    %14 = memref.load %arg2[%c1_18, %c4_19] : memref<2x10xf32, #tpu.memory_space<smem>>
    %c1_20 = arith.constant 1 : index
    %c5_21 = arith.constant 5 : index
    %15 = memref.load %arg2[%c1_20, %c5_21] : memref<2x10xf32, #tpu.memory_space<smem>>
    %c1_22 = arith.constant 1 : index
    %c6_23 = arith.constant 6 : index
    %16 = memref.load %arg2[%c1_22, %c6_23] : memref<2x10xf32, #tpu.memory_space<smem>>
    %c1_24 = arith.constant 1 : index
    %c7_25 = arith.constant 7 : index
    %17 = memref.load %arg2[%c1_24, %c7_25] : memref<2x10xf32, #tpu.memory_space<smem>>
    %c1_26 = arith.constant 1 : index
    %c8_27 = arith.constant 8 : index
    %18 = memref.load %arg2[%c1_26, %c8_27] : memref<2x10xf32, #tpu.memory_space<smem>>
    %c1_28 = arith.constant 1 : index
    %c9_29 = arith.constant 9 : index
    %19 = memref.load %arg2[%c1_28, %c9_29] : memref<2x10xf32, #tpu.memory_space<smem>>
    %c0_30 = arith.constant 0 : index
    %20 = memref.load %arg3[%c0_30] : memref<10xf32, #tpu.memory_space<smem>>
    %c1_31 = arith.constant 1 : index
    %21 = memref.load %arg3[%c1_31] : memref<10xf32, #tpu.memory_space<smem>>
    %c2_32 = arith.constant 2 : index
    %22 = memref.load %arg3[%c2_32] : memref<10xf32, #tpu.memory_space<smem>>
    %c3_33 = arith.constant 3 : index
    %23 = memref.load %arg3[%c3_33] : memref<10xf32, #tpu.memory_space<smem>>
    %c4_34 = arith.constant 4 : index
    %24 = memref.load %arg3[%c4_34] : memref<10xf32, #tpu.memory_space<smem>>
    %c5_35 = arith.constant 5 : index
    %25 = memref.load %arg3[%c5_35] : memref<10xf32, #tpu.memory_space<smem>>
    %c6_36 = arith.constant 6 : index
    %26 = memref.load %arg3[%c6_36] : memref<10xf32, #tpu.memory_space<smem>>
    %c7_37 = arith.constant 7 : index
    %27 = memref.load %arg3[%c7_37] : memref<10xf32, #tpu.memory_space<smem>>
    %c8_38 = arith.constant 8 : index
    %28 = memref.load %arg3[%c8_38] : memref<10xf32, #tpu.memory_space<smem>>
    %c9_39 = arith.constant 9 : index
    %29 = memref.load %arg3[%c9_39] : memref<10xf32, #tpu.memory_space<smem>>
    %c0_40 = arith.constant 0 : index
    %c0_41 = arith.constant 0 : index
    %30 = memref.load %arg4[%c0_40, %c0_41] : memref<10x1xf32, #tpu.memory_space<smem>>
    %c1_42 = arith.constant 1 : index
    %c0_43 = arith.constant 0 : index
    %31 = memref.load %arg4[%c1_42, %c0_43] : memref<10x1xf32, #tpu.memory_space<smem>>
    %c2_44 = arith.constant 2 : index
    %c0_45 = arith.constant 0 : index
    %32 = memref.load %arg4[%c2_44, %c0_45] : memref<10x1xf32, #tpu.memory_space<smem>>
    %c3_46 = arith.constant 3 : index
    %c0_47 = arith.constant 0 : index
    %33 = memref.load %arg4[%c3_46, %c0_47] : memref<10x1xf32, #tpu.memory_space<smem>>
    %c4_48 = arith.constant 4 : index
    %c0_49 = arith.constant 0 : index
    %34 = memref.load %arg4[%c4_48, %c0_49] : memref<10x1xf32, #tpu.memory_space<smem>>
    %c5_50 = arith.constant 5 : index
    %c0_51 = arith.constant 0 : index
    %35 = memref.load %arg4[%c5_50, %c0_51] : memref<10x1xf32, #tpu.memory_space<smem>>
    %c6_52 = arith.constant 6 : index
    %c0_53 = arith.constant 0 : index
    %36 = memref.load %arg4[%c6_52, %c0_53] : memref<10x1xf32, #tpu.memory_space<smem>>
    %c7_54 = arith.constant 7 : index
    %c0_55 = arith.constant 0 : index
    %37 = memref.load %arg4[%c7_54, %c0_55] : memref<10x1xf32, #tpu.memory_space<smem>>
    %c8_56 = arith.constant 8 : index
    %c0_57 = arith.constant 0 : index
    %38 = memref.load %arg4[%c8_56, %c0_57] : memref<10x1xf32, #tpu.memory_space<smem>>
    %c9_58 = arith.constant 9 : index
    %c0_59 = arith.constant 0 : index
    %39 = memref.load %arg4[%c9_58, %c0_59] : memref<10x1xf32, #tpu.memory_space<smem>>
    %c0_60 = arith.constant 0 : index
    %40 = memref.load %arg5[%c0_60] : memref<1xf32, #tpu.memory_space<smem>>
    %c0_61 = arith.constant 0 : index
    %c0_62 = arith.constant 0 : index
    %c0_63 = arith.constant 0 : index
    %41 = vector.load %arg1[%c0_61, %c0_62, %c0_63] : memref<2x8x128xf32, #tpu.memory_space<vmem>>, vector<1x8x128xf32>
    %42 = vector.shape_cast %41 : vector<1x8x128xf32> to vector<8x128xf32>
    %c1_64 = arith.constant 1 : index
    %c0_65 = arith.constant 0 : index
    %c0_66 = arith.constant 0 : index
    %43 = vector.load %arg1[%c1_64, %c0_65, %c0_66] : memref<2x8x128xf32, #tpu.memory_space<vmem>>, vector<1x8x128xf32>
    %44 = vector.shape_cast %43 : vector<1x8x128xf32> to vector<8x128xf32>
    %45 = vector.broadcast %0 : f32 to vector<8x128xf32>
    %46 = arith.mulf %42, %45 : vector<8x128xf32>
    %47 = vector.broadcast %10 : f32 to vector<8x128xf32>
    %48 = arith.mulf %44, %47 : vector<8x128xf32>
    %49 = arith.addf %46, %48 : vector<8x128xf32>
    %50 = vector.broadcast %20 : f32 to vector<8x128xf32>
    %51 = arith.addf %49, %50 : vector<8x128xf32>
    %cst = arith.constant 0.000000e+00 : f32
    %52 = vector.broadcast %cst : f32 to vector<8x128xf32>
    %53 = arith.maximumf %51, %52 : vector<8x128xf32>
    %54 = vector.broadcast %30 : f32 to vector<8x128xf32>
    %55 = arith.mulf %53, %54 : vector<8x128xf32>
    %56 = vector.broadcast %1 : f32 to vector<8x128xf32>
    %57 = arith.mulf %42, %56 : vector<8x128xf32>
    %58 = vector.broadcast %11 : f32 to vector<8x128xf32>
    %59 = arith.mulf %44, %58 : vector<8x128xf32>
    %60 = arith.addf %57, %59 : vector<8x128xf32>
    %61 = vector.broadcast %21 : f32 to vector<8x128xf32>
    %62 = arith.addf %60, %61 : vector<8x128xf32>
    %cst_67 = arith.constant 0.000000e+00 : f32
    %63 = vector.broadcast %cst_67 : f32 to vector<8x128xf32>
    %64 = arith.maximumf %62, %63 : vector<8x128xf32>
    %65 = vector.broadcast %31 : f32 to vector<8x128xf32>
    %66 = arith.mulf %64, %65 : vector<8x128xf32>
    %67 = arith.addf %55, %66 : vector<8x128xf32>
    %68 = vector.broadcast %2 : f32 to vector<8x128xf32>
    %69 = arith.mulf %42, %68 : vector<8x128xf32>
    %70 = vector.broadcast %12 : f32 to vector<8x128xf32>
    %71 = arith.mulf %44, %70 : vector<8x128xf32>
    %72 = arith.addf %69, %71 : vector<8x128xf32>
    %73 = vector.broadcast %22 : f32 to vector<8x128xf32>
    %74 = arith.addf %72, %73 : vector<8x128xf32>
    %cst_68 = arith.constant 0.000000e+00 : f32
    %75 = vector.broadcast %cst_68 : f32 to vector<8x128xf32>
    %76 = arith.maximumf %74, %75 : vector<8x128xf32>
    %77 = vector.broadcast %32 : f32 to vector<8x128xf32>
    %78 = arith.mulf %76, %77 : vector<8x128xf32>
    %79 = arith.addf %67, %78 : vector<8x128xf32>
    %80 = vector.broadcast %3 : f32 to vector<8x128xf32>
    %81 = arith.mulf %42, %80 : vector<8x128xf32>
    %82 = vector.broadcast %13 : f32 to vector<8x128xf32>
    %83 = arith.mulf %44, %82 : vector<8x128xf32>
    %84 = arith.addf %81, %83 : vector<8x128xf32>
    %85 = vector.broadcast %23 : f32 to vector<8x128xf32>
    %86 = arith.addf %84, %85 : vector<8x128xf32>
    %cst_69 = arith.constant 0.000000e+00 : f32
    %87 = vector.broadcast %cst_69 : f32 to vector<8x128xf32>
    %88 = arith.maximumf %86, %87 : vector<8x128xf32>
    %89 = vector.broadcast %33 : f32 to vector<8x128xf32>
    %90 = arith.mulf %88, %89 : vector<8x128xf32>
    %91 = arith.addf %79, %90 : vector<8x128xf32>
    %92 = vector.broadcast %4 : f32 to vector<8x128xf32>
    %93 = arith.mulf %42, %92 : vector<8x128xf32>
    %94 = vector.broadcast %14 : f32 to vector<8x128xf32>
    %95 = arith.mulf %44, %94 : vector<8x128xf32>
    %96 = arith.addf %93, %95 : vector<8x128xf32>
    %97 = vector.broadcast %24 : f32 to vector<8x128xf32>
    %98 = arith.addf %96, %97 : vector<8x128xf32>
    %cst_70 = arith.constant 0.000000e+00 : f32
    %99 = vector.broadcast %cst_70 : f32 to vector<8x128xf32>
    %100 = arith.maximumf %98, %99 : vector<8x128xf32>
    %101 = vector.broadcast %34 : f32 to vector<8x128xf32>
    %102 = arith.mulf %100, %101 : vector<8x128xf32>
    %103 = arith.addf %91, %102 : vector<8x128xf32>
    %104 = vector.broadcast %5 : f32 to vector<8x128xf32>
    %105 = arith.mulf %42, %104 : vector<8x128xf32>
    %106 = vector.broadcast %15 : f32 to vector<8x128xf32>
    %107 = arith.mulf %44, %106 : vector<8x128xf32>
    %108 = arith.addf %105, %107 : vector<8x128xf32>
    %109 = vector.broadcast %25 : f32 to vector<8x128xf32>
    %110 = arith.addf %108, %109 : vector<8x128xf32>
    %cst_71 = arith.constant 0.000000e+00 : f32
    %111 = vector.broadcast %cst_71 : f32 to vector<8x128xf32>
    %112 = arith.maximumf %110, %111 : vector<8x128xf32>
    %113 = vector.broadcast %35 : f32 to vector<8x128xf32>
    %114 = arith.mulf %112, %113 : vector<8x128xf32>
    %115 = arith.addf %103, %114 : vector<8x128xf32>
    %116 = vector.broadcast %6 : f32 to vector<8x128xf32>
    %117 = arith.mulf %42, %116 : vector<8x128xf32>
    %118 = vector.broadcast %16 : f32 to vector<8x128xf32>
    %119 = arith.mulf %44, %118 : vector<8x128xf32>
    %120 = arith.addf %117, %119 : vector<8x128xf32>
    %121 = vector.broadcast %26 : f32 to vector<8x128xf32>
    %122 = arith.addf %120, %121 : vector<8x128xf32>
    %cst_72 = arith.constant 0.000000e+00 : f32
    %123 = vector.broadcast %cst_72 : f32 to vector<8x128xf32>
    %124 = arith.maximumf %122, %123 : vector<8x128xf32>
    %125 = vector.broadcast %36 : f32 to vector<8x128xf32>
    %126 = arith.mulf %124, %125 : vector<8x128xf32>
    %127 = arith.addf %115, %126 : vector<8x128xf32>
    %128 = vector.broadcast %7 : f32 to vector<8x128xf32>
    %129 = arith.mulf %42, %128 : vector<8x128xf32>
    %130 = vector.broadcast %17 : f32 to vector<8x128xf32>
    %131 = arith.mulf %44, %130 : vector<8x128xf32>
    %132 = arith.addf %129, %131 : vector<8x128xf32>
    %133 = vector.broadcast %27 : f32 to vector<8x128xf32>
    %134 = arith.addf %132, %133 : vector<8x128xf32>
    %cst_73 = arith.constant 0.000000e+00 : f32
    %135 = vector.broadcast %cst_73 : f32 to vector<8x128xf32>
    %136 = arith.maximumf %134, %135 : vector<8x128xf32>
    %137 = vector.broadcast %37 : f32 to vector<8x128xf32>
    %138 = arith.mulf %136, %137 : vector<8x128xf32>
    %139 = arith.addf %127, %138 : vector<8x128xf32>
    %140 = vector.broadcast %8 : f32 to vector<8x128xf32>
    %141 = arith.mulf %42, %140 : vector<8x128xf32>
    %142 = vector.broadcast %18 : f32 to vector<8x128xf32>
    %143 = arith.mulf %44, %142 : vector<8x128xf32>
    %144 = arith.addf %141, %143 : vector<8x128xf32>
    %145 = vector.broadcast %28 : f32 to vector<8x128xf32>
    %146 = arith.addf %144, %145 : vector<8x128xf32>
    %cst_74 = arith.constant 0.000000e+00 : f32
    %147 = vector.broadcast %cst_74 : f32 to vector<8x128xf32>
    %148 = arith.maximumf %146, %147 : vector<8x128xf32>
    %149 = vector.broadcast %38 : f32 to vector<8x128xf32>
    %150 = arith.mulf %148, %149 : vector<8x128xf32>
    %151 = arith.addf %139, %150 : vector<8x128xf32>
    %152 = vector.broadcast %9 : f32 to vector<8x128xf32>
    %153 = arith.mulf %42, %152 : vector<8x128xf32>
    %154 = vector.broadcast %19 : f32 to vector<8x128xf32>
    %155 = arith.mulf %44, %154 : vector<8x128xf32>
    %156 = arith.addf %153, %155 : vector<8x128xf32>
    %157 = vector.broadcast %29 : f32 to vector<8x128xf32>
    %158 = arith.addf %156, %157 : vector<8x128xf32>
    %cst_75 = arith.constant 0.000000e+00 : f32
    %159 = vector.broadcast %cst_75 : f32 to vector<8x128xf32>
    %160 = arith.maximumf %158, %159 : vector<8x128xf32>
    %161 = vector.broadcast %39 : f32 to vector<8x128xf32>
    %162 = arith.mulf %160, %161 : vector<8x128xf32>
    %163 = arith.addf %151, %162 : vector<8x128xf32>
    %164 = vector.broadcast %40 : f32 to vector<8x128xf32>
    %165 = arith.addf %163, %164 : vector<8x128xf32>
    %c0_76 = arith.constant 0 : index
    %c0_77 = arith.constant 0 : index
    %166 = vector.load %arg6[%c0_76, %c0_77] : memref<8x128xf32, #tpu.memory_space<vmem>>, vector<8x128xf32>
    tpu.vector_store %arg6[%c0_76, %c0_77], %165 {strides = array<i32>} : memref<8x128xf32, #tpu.memory_space<vmem>>, vector<8x128xf32>,
    return
  }
  func.func @transform_0(%arg0: i32) -> (i32, i32, i32) {
    %c0_i32 = arith.constant 0 : i32
    %c0_i32_0 = arith.constant 0 : i32
    %c0_i32_1 = arith.constant 0 : i32
    return %c0_i32, %arg0, %c0_i32_0 : i32, i32, i32
  }
  func.func @transform_1(%arg0: i32) -> (i32, i32) {
    %c0_i32 = arith.constant 0 : i32
    %c0_i32_0 = arith.constant 0 : i32
    %c0_i32_1 = arith.constant 0 : i32
    return %c0_i32, %c0_i32_0 : i32, i32
  }
  func.func @transform_2(%arg0: i32) -> i32 {
    %c0_i32 = arith.constant 0 : i32
    %c0_i32_0 = arith.constant 0 : i32
    return %c0_i32 : i32
  }
  func.func @transform_3(%arg0: i32) -> (i32, i32) {
    %c0_i32 = arith.constant 0 : i32
    %c0_i32_0 = arith.constant 0 : i32
    %c0_i32_1 = arith.constant 0 : i32
    return %c0_i32, %c0_i32_0 : i32, i32
  }
  func.func @transform_4(%arg0: i32) -> i32 {
    %c0_i32 = arith.constant 0 : i32
    %c0_i32_0 = arith.constant 0 : i32
    return %c0_i32 : i32
  }
  func.func @transform_5(%arg0: i32) -> (i32, i32) {
    %c0_i32 = arith.constant 0 : i32
    %c0_i32_0 = arith.constant 0 : i32
    return %arg0, %c0_i32 : i32, i32
  }
}

</mosaic_0001>

<bundles_post_ra>
// kernel: tpu_custom_call.1
= control target key start
LH: loop header
LB: loop body
LE: loop exit
PB: predicated region body
PF: predicated region fallthrough
CT: control target
= control target key end

     0   :  { %11 = vsyncpa [#allocation5], 0  ;;  %s537_s0 = inlined_call_operand.vmem [shape: f32[2,8,128], index: 0, kind: input, shape index: {}]   ;;  %s538_s1 = inlined_call_operand.vmem [shape: f32[2,10], index: 1, kind: input, shape index: {}]   ;;  %s539_s2 = inlined_call_operand.vmem [shape: f32[10], index: 2, kind: input, shape index: {}]   ;;  %s540_s3 = inlined_call_operand.vmem [shape: f32[10,1], index: 3, kind: input, shape index: {}]   ;;  %s541_s4 = inlined_call_operand.<no memory space> [shape: f32[1], index: 4, kind: input, shape index: {}]   ;;  %s542_s5 = inlined_call_operand.hbm [shape: f32[8,128], index: 5, kind: output, shape index: {}]  }
   0x1   :  { %12 = vsyncpa [#allocation7], 0  ;;  %s32_s20 = sshll.u32 %s539_s2, 4  ;;  %s33_s20 = int_to_ptr.vmem [resolvable:$true] %s32_s20 }
   0x2   :  { %13 = vsyncpa [#allocation4], 0  ;;  %s22_s23 = sshll.u32 %s538_s1, 4  ;;  %s276_s24 = scalar_lea.vmem %s33_s20, 16  ;;  %s23_s23 = int_to_ptr.vmem [resolvable:$true] %s22_s23 }
   0x3   :  { %p277_p0 = scmp.ne.s32.totalorder %s33_s20, %s276_s24  ;;  %p281_p1 = scmp.lt.s32.totalorder %s33_s20, %s33_s20 }
   0x4   :  { %p282_p2 = scmp.lt.s32.totalorder %s276_s24, %s276_s24 }
   0x6   :  { %p283_p3 = por %p282_p2, %p281_p1 }
   0x8   :  { %p284_p4 = pnand %p283_p3, %p277_p0 }
   0xa   :  { %287 = shalt.err (!%p284_p4)
}
   0xb   :  { %s340_s25 = smov [#allocation6]   ;;  %s288_s26 = scalar_lea.vmem %s23_s23, 32 }
   0xc   :  { %35 = dma.vmem_to_smem %s33_s20, 16, %s340_s25, [#allocation7]  }
   0xd   :  { %p289_p5 = scmp.ne.s32.totalorder %s23_s23, %s288_s26  ;;  %p293_p6 = scmp.lt.s32.totalorder %s23_s23, %s23_s23 }
   0xe   :  { %p294_p7 = scmp.lt.s32.totalorder %s288_s26, %s288_s26 }
  0x10   :  { %p295_p8 = por %p294_p7, %p293_p6 }
  0x12   :  { %p296_p9 = pnand %p295_p8, %p289_p5 }
  0x14   :  { %299 = shalt.err (!%p296_p9)
}
  0x15   :  { %s341_s2 = smov [#allocation3]   ;;  %s41_s28 = sshll.u32 %s540_s3, 4  ;;  %s42_s28 = int_to_ptr.vmem [resolvable:$true] %s41_s28 }
  0x16   :  { %25 = dma.vmem_to_smem %s23_s23, 32, %s341_s2, [#allocation5]  }
  0x17   :  { %s300_s29 = scalar_lea.vmem %s42_s28, 256  ;;  %p305_p11 = scmp.lt.s32.totalorder %s42_s28, %s42_s28 }
  0x18   :  { %p301_p10 = scmp.ne.s32.totalorder %s42_s28, %s300_s29  ;;  %p306_p12 = scmp.lt.s32.totalorder %s300_s29, %s300_s29 }
  0x1a   :  { %p307_p13 = por %p306_p12, %p305_p11 }
  0x1c   :  { %p308_p0 = pnand %p307_p13, %p301_p10 }
  0x1e   :  { %311 = shalt.err (!%p308_p0)
}
  0x1f   :  { %s342_s30 = smov [#allocation8]   ;;  %s343_s6 = smov 128  }
  0x20   :  { %s344_s7 = smov 8  }
  0x21   :  { %47 = dma.vmem_to_smem %s42_s28, 256, %s342_s30, [#allocation7], %s343_s6, %s343_s6, %s344_s7  }
  0x22   :  { %334 = dma.done.wait [#allocation5], 32  }
  0x23   :  { %335 = vsyncadd [#allocation5], 4294967264 }
  0x24   :  { %336 = dma.done.wait [#allocation7], 272  }
  0x25   :  { %337 = vsyncadd [#allocation7], 4294967024 }
  0x26   :  { %59 = sfence }
  0x27   :  { %s60_s8 = sld [smem:[#allocation3]]  ;;  %s232_s9 = sld [smem:[#allocation3 + $0x1]]  ;;  %v398_v0 = vld [vmem:[%s537_s0] sm:$0xff]  ;;  %v416_v8 = vld [vmem:[%s537_s0 + $0x8] sm:$0xff] }
  0x28   :  { %s233_s3 = sld [smem:[#allocation3 + $0x2]]  ;;  %s234_s10 = sld [smem:[#allocation3 + $0x3]] }
  0x29   :  { %s235_s11 = sld [smem:[#allocation3 + $0x4]]  ;;  %s236_s12 = sld [smem:[#allocation3 + $0x5]] }
  0x2a   :  { %s237_s13 = sld [smem:[#allocation3 + $0x6]]  ;;  %s385_s14 = sld [smem:[#allocation3 + $0x7]] }
  0x2b   :  { %s387_s15 = sld [smem:[#allocation3 + $0x8]]  ;;  %s389_s16 = sld [smem:[#allocation3 + $0x9]] }
  0x2c   :  { %s391_s17 = sld [smem:[#allocation3 + $0x80]]  ;;  %s393_s18 = sld [smem:[#allocation3 + $0x81]] }
  0x2d   :  { %s400_s21 = sld [smem:[#allocation3 + $0x82]]  ;;  %s402_s22 = sld [smem:[#allocation3 + $0x83]]  ;;  %v104_v1 = vstv %s60_s8  ;;  %v114_v2 = vstv %s232_s9 }
  0x2e   :  { %s404_s23 = sld [smem:[#allocation3 + $0x84]]  ;;  %s406_s24 = sld [smem:[#allocation3 + $0x85]]  ;;  %v125_v3 = vstv %s233_s3  ;;  %v136_v4 = vstv %s234_s10  ;;  %v105_v5 = vmul.f32 %v104_v1, %v398_v0  ;;  %v115_v9 = vmul.f32 %v114_v2, %v398_v0 }
  0x2f   :  { %s408_s25 = sld [smem:[#allocation3 + $0x86]]  ;;  %v147_v6 = vstv %s235_s11  ;;  %v158_v7 = vstv %s236_s12  ;;  %s411_s26 = sld [smem:[#allocation3 + $0x87]]  ;;  %v126_v10 = vmul.f32 %v125_v3, %v398_v0  ;;  %v137_v13 = vmul.f32 %v136_v4, %v398_v0 }
  0x30   :  { %v169_v11 = vstv %s237_s13  ;;  %v180_v12 = vstv %s385_s14  ;;  %s421_s27 = sld [smem:[#allocation6]]  ;;  %s423_s28 = sld [smem:[#allocation6 + $0x1]]  ;;  %v148_v14 = vmul.f32 %v147_v6, %v398_v0  ;;  %v159_v15 = vmul.f32 %v158_v7, %v398_v0 }
  0x31   :  { %v429_v16 = vmul.f32 %v169_v11, %v398_v0  ;;  %s431_s0 = sld [smem:[#allocation6 + $0x2]]  ;;  %s433_s29 = sld [smem:[#allocation6 + $0x3]]  ;;  %v438_v19 = vmul.f32 %v180_v12, %v398_v0  ;;  %v191_v20 = vstv %s387_s15  ;;  %v202_v36 = vstv %s389_s16 }
  0x32   :  { %v106_v17 = vstv %s391_s17  ;;  %v116_v18 = vstv %s393_s18  ;;  %s441_s30 = sld [smem:[#allocation6 + $0x4]]  ;;  %s443_s6 = sld [smem:[#allocation6 + $0x5]] }
  0x33   :  { %v107_v21 = vmul.f32 %v416_v8, %v106_v17  ;;  %v117_v22 = vmul.f32 %v416_v8, %v116_v18  ;;  %v127_v23 = vstv %s400_s21  ;;  %v138_v24 = vstv %s402_s22  ;;  %s453_s7 = sld [smem:[#allocation6 + $0x6]]  ;;  %s457_s8 = sld [smem:[#allocation8]] }
  0x34   :  { %v128_v25 = vmul.f32 %v416_v8, %v127_v23  ;;  %v139_v26 = vmul.f32 %v416_v8, %v138_v24  ;;  %v149_v27 = vstv %s404_s23  ;;  %v160_v28 = vstv %s406_s24  ;;  %s459_s9 = sld [smem:[#allocation8 + $0x80]]  ;;  %s477_s14 = sld [smem:[#allocation6 + $0x7]] }
  0x35   :  { %v108_v29 = vadd.f32 %v107_v21, %v105_v5  ;;  %v118_v30 = vadd.f32 %v117_v22, %v115_v9  ;;  %v150_v31 = vmul.f32 %v416_v8, %v149_v27  ;;  %v161_v32 = vmul.f32 %v416_v8, %v160_v28  ;;  %s463_s3 = sld [smem:[#allocation8 + $0x100]]  ;;  %s481_s16 = sld [smem:[#allocation3 + $0x89]] }
  0x36   :  { %v129_v33 = vadd.f32 %v128_v25, %v126_v10  ;;  %v140_v34 = vadd.f32 %v139_v26, %v137_v13  ;;  %v171_v35 = vstv %s408_s25  ;;  %s465_s10 = sld [smem:[#allocation8 + $0x180]]  ;;  %v109_v37 = vstv %s421_s27  ;;  %s489_s19 = sld [smem:[#allocation6 + $0x9]] }
  0x37   :  { %v119_v38 = vstv %s423_s28  ;;  %v151_v39 = vadd.f32 %v150_v31, %v148_v14  ;;  %v162_v40 = vadd.f32 %v161_v32, %v159_v15  ;;  %s469_s11 = sld [smem:[#allocation8 + $0x200]]  ;;  %v110_v41 = vadd.f32 %v109_v37, %v108_v29  ;;  %s345_s24 = smov [#allocation9]  }
  0x38   :  { %s471_s12 = sld [smem:[#allocation8 + $0x280]]  ;;  %v120_v42 = vadd.f32 %v119_v38, %v118_v30  ;;  %v130_v43 = vstv %s431_s0  ;;  %v141_v44 = vstv %s433_s29  ;;  %v152_v47 = vstv %s441_s30  ;;  %s222_s25 = sshll.u32 %s345_s24, 4  ;;  %s223_s25 = int_to_ptr.vmem [resolvable:$true] %s222_s25 }
  0x39   :  { %s475_s13 = sld [smem:[#allocation3 + $0x88]]  ;;  %v131_v45 = vadd.f32 %v130_v43, %v129_v33  ;;  %v142_v46 = vadd.f32 %v141_v44, %v140_v34  ;;  %v163_v48 = vstv %s443_s6  ;;  %v111_v49 = vmax.f32 %v110_v41, 0.0  ;;  %p317_p2 = scmp.lt.s32.totalorder %s223_s25, %s223_s25 }
  0x3a   :  { %s483_s17 = sld [smem:[#allocation8 + $0x300]]  ;;  %v121_v50 = vmax.f32 %v120_v42, 0.0  ;;  %v153_v51 = vadd.f32 %v152_v47, %v151_v39  ;;  %v164_v52 = vadd.f32 %v163_v48, %v162_v40  ;;  %v172_v55 = vmul.f32 %v416_v8, %v171_v35 }
  0x3b   :  { %s485_s18 = sld [smem:[#allocation6 + $0x8]]  ;;  %v132_v53 = vmax.f32 %v131_v45, 0.0  ;;  %v143_v54 = vmax.f32 %v142_v46, 0.0  ;;  %v182_v56 = vstv %s411_s26  ;;  %v112_v57 = vstv %s457_s8  ;;  %s312_s26 = scalar_lea.vmem %s223_s25, 128 }
  0x3c   :  { %v122_v58 = vstv %s459_s9  ;;  %v154_v59 = vmax.f32 %v153_v51, 0.0  ;;  %v165_v60 = vmax.f32 %v164_v52, 0.0  ;;  %s493_s20 = sld [smem:[#allocation8 + $0x380]]  ;;  %v113_v61 = vmul.f32 %v112_v57, %v111_v49  ;;  %p313_p1 = scmp.ne.s32.totalorder %s223_s25, %s312_s26 }
  0x3d   :  { %v123_v62 = vmul.f32 %v122_v58, %v121_v50  ;;  %v133_v63 = vstv %s463_s3  ;;  %v144_v1 = vstv %s465_s10  ;;  %v155_v3 = vstv %s469_s11  ;;  %s500_s21 = sld [smem:[#allocation8 + $0x400]]  ;;  %p318_p3 = scmp.lt.s32.totalorder %s312_s26, %s312_s26 }
  0x3e   :  { %v134_v2 = vmul.f32 %v133_v63, %v132_v53  ;;  %v166_v4 = vstv %s471_s12  ;;  %v174_v5 = vstv %s453_s7  ;;  %v145_v7 = vmul.f32 %v144_v1, %v143_v54  ;;  %s506_s22 = sld [smem:[#allocation8 + $0x480]] }
  0x3f   :  { %v124_v6 = vadd.f32 %v123_v62, %v113_v61  ;;  %v173_v9 = vadd.f32 %v172_v55, %v429_v16  ;;  %v192_v10 = vmul.f32 %v191_v20, %v398_v0  ;;  %v156_v11 = vmul.f32 %v155_v3, %v154_v59  ;;  %p319_p4 = por %p318_p3, %p317_p2 }
  0x40   :  { %v167_v12 = vmul.f32 %v166_v4, %v165_v60  ;;  %v183_v13 = vmul.f32 %v416_v8, %v182_v56  ;;  %v203_v14 = vmul.f32 %v202_v36, %v398_v0  ;;  %v185_v18 = vstv %s477_s14 }
  0x41   :  { %v135_v15 = vadd.f32 %v134_v2, %v124_v6  ;;  %v175_v17 = vadd.f32 %v174_v5, %v173_v9  ;;  %v193_v21 = vstv %s475_s13  ;;  %v177_v22 = vstv %s483_s17  ;;  %p320_p5 = pnand %p319_p4, %p313_p1 }
  0x42   :  { %v184_v16 = vadd.f32 %v183_v13, %v438_v19  ;;  %v194_v20 = vmul.f32 %v416_v8, %v193_v21  ;;  %v204_v23 = vstv %s481_s16  ;;  %v196_v26 = vstv %s485_s18 }
  0x43   :  { %v146_v24 = vadd.f32 %v145_v7, %v135_v15  ;;  %v176_v25 = vmax.f32 %v175_v17, 0.0  ;;  %v205_v27 = vmul.f32 %v416_v8, %v204_v23  ;;  %v207_v29 = vstv %s489_s19 }
  0x44   :  { %v186_v28 = vadd.f32 %v185_v18, %v184_v16  ;;  %v195_v0 = vadd.f32 %v194_v20, %v192_v10  ;;  %v188_v32 = vstv %s493_s20  ;;  %v199_v36 = vstv %s500_s21 }
  0x45   :  { %v157_v30 = vadd.f32 %v156_v11, %v146_v24  ;;  %v178_v31 = vmul.f32 %v177_v22, %v176_v25  ;;  %v206_v33 = vadd.f32 %v205_v27, %v203_v14  ;;  %v210_v40 = vstv %s506_s22 }
  0x46   :  { %v187_v34 = vmax.f32 %v186_v28, 0.0  ;;  %v197_v35 = vadd.f32 %v196_v26, %v195_v0  ;;  %v213_v46 = vstv %s541_s4 }
  0x47   :  { %v168_v19 = vadd.f32 %v167_v12, %v157_v30  ;;  %v208_v37 = vadd.f32 %v207_v29, %v206_v33 }
  0x48   :  { %v189_v38 = vmul.f32 %v188_v32, %v187_v34  ;;  %v198_v39 = vmax.f32 %v197_v35, 0.0 }
  0x49   :  { %v179_v41 = vadd.f32 %v178_v31, %v168_v19  ;;  %v209_v42 = vmax.f32 %v208_v37, 0.0 }
  0x4a   :  { %v200_v43 = vmul.f32 %v199_v36, %v198_v39 }
  0x4b   :  { %v190_v44 = vadd.f32 %v189_v38, %v179_v41  ;;  %v211_v8 = vmul.f32 %v210_v40, %v209_v42 }
  0x4d   :  { %v201_v45 = vadd.f32 %v200_v43, %v190_v44 }
  0x4f   :  { %v212_v47 = vadd.f32 %v211_v8, %v201_v45 }
  0x51   :  { %v214_v48 = vadd.f32 %v213_v46, %v212_v47 }
  0x53   :  { %215 = vst [vmem:[#allocation9] sm:$0xff] %v214_v48 }
  0x54   :  { %323 = shalt.err (!%p320_p5)
}
  0x55   :  { %s324_s27 = scalar_lea.hbm %s542_s5, 128 }
  0x56   :  { %p325_p6 = scmp.ne.s32.totalorder %s542_s5, %s324_s27  ;;  %p328_p7 = scmp.lt.u32.totalorder %s324_s27, %s542_s5 }
  0x58   :  { %p330_p8 = pnand %p328_p7, %p325_p6 }
  0x5a   :  { %333 = shalt.err (!%p330_p8)
}
  0x5b   :  { %225 = dma.vmem_to_hbm [thread:$0]  %s223_s25, 128, %s542_s5, [#allocation4]  }
  0x5c   :  { %338 = dma.done.wait [#allocation4], 128  }
  0x5d   :  { %339 = vsyncadd [#allocation4], 4294967168 }
  0x5e   :  { %229 = vsyncpa [#allocation4], 1 }
  0x5f   :  { %230 = vsyncpa [#allocation5], 1 }
  0x60   :  { %231 = vsyncpa [#allocation7], 1 }

</bundles_post_ra>
